<compile_context>
chip_gen: v7x
topology: tpu7x:2x2x1
jax: 0.10.0
libtpu: 0.0.40
codegen_flags: <defaults>
</compile_context>

<pallas_src>
import functools

import numpy as np
import jax
import jax.numpy as jnp
from jax import lax
from jax.experimental import pallas as pl
from jax.experimental.pallas import tpu as pltpu


# ----------------------------------------------------------------------------
# Kernel: one (batch, lane-tile) block per grid step.
# ----------------------------------------------------------------------------
def _mixed_samples_kernel(bins_ref, dmin_ref, drange_ref,
                          samples_ref, widths_ref, *, na, nu, eps):
    D = na + nu
    tn = bins_ref.shape[-1]

    logits = bins_ref[...]                      # (na, tn) f32
    dmin = dmin_ref[0, 0]                       # per-batch scalar
    drange = drange_ref[0, 0]                   # per-batch scalar (dmax - dmin)

    # --- AdaptiveBins 'linear' norm: relu + eps, normalize over the bin axis.
    # Exact divide on the (1, tn) row: this kernel has no erf/erfinv-style EUP
    # load (unlike the gaussian-bins variant), and the exact divide keeps the
    # sample values aligned with the reference so the merge below never
    # disagrees on near-ties.
    bpos = jnp.maximum(logits, 0.0) + eps                      # (na, tn) > 0
    denom = jnp.sum(bpos, axis=0, keepdims=True)               # (1, tn)
    w = (bpos / denom) * drange                                # adaptive widths

    # --- adaptive depth samples: a_i = dmin + sum_{j<i} w_j + 0.5 * w_i.
    # Running prefix over the tiny static bin axis; strictly increasing.
    a_rows = []
    csum = jnp.zeros((1, tn), jnp.float32)
    for i in range(na):
        wi = w[i:i + 1, :]
        a_rows.append(dmin + (csum + 0.5 * wi))
        csum = csum + wi

    # --- uniform depth samples: per-batch scalars, strictly increasing.
    uinterval = drange / float(nu - 1)
    u_vals = [dmin + float(k) * uinterval for k in range(nu)]

    # --- merge of the two already-sorted sample sets via merge ranks:
    #   rank(a_i) = i + #{k : u_k <  a_i}
    #   rank(u_k) = k + #{i : a_i <= u_k}
    # The two predicates are exact IEEE complements on identical operands, so
    # the ranks always form a permutation of 0..D-1 (ties break adaptive-first,
    # i.e. torch.cat order; the sorted *values* are tie-order independent).
    a_ranks = []
    for i, a_i in enumerate(a_rows):
        cnt = jnp.full((1, tn), i, dtype=jnp.int32)
        for u_k in u_vals:
            cnt = cnt + (u_k < a_i).astype(jnp.int32)
        a_ranks.append(cnt)
    u_ranks = []
    for k, u_k in enumerate(u_vals):
        cnt = jnp.full((1, tn), k, dtype=jnp.int32)
        for a_i in a_rows:
            cnt = cnt + (a_i <= u_k).astype(jnp.int32)
        u_ranks.append(cnt)

    # --- scatter-by-rank => depth samples sorted along the sublane (depth) axis.
    r_iota = lax.broadcasted_iota(jnp.int32, (D, tn), 0)
    sorted_s = jnp.zeros((D, tn), jnp.float32)
    for a_i, rk in zip(a_rows, a_ranks):
        sorted_s = sorted_s + jnp.where(r_iota == rk, a_i, 0.0)
    for u_k, rk in zip(u_vals, u_ranks):
        sorted_s = sorted_s + jnp.where(r_iota == rk, u_k, 0.0)

    # --- bin widths: bw[r] = s[r+1] - s[r] for r < D-1, last row repeated.
    # Single constant (D, D) difference matrix on the MXU (free filler slot).
    rr = lax.broadcasted_iota(jnp.int32, (D, D), 0)
    cc = lax.broadcasted_iota(jnp.int32, (D, D), 1)
    plus_col = jnp.minimum(rr + 1, D - 1)
    minus_col = jnp.minimum(rr, D - 2)
    dmat = (jnp.where(cc == plus_col, 1.0, 0.0)
            - jnp.where(cc == minus_col, 1.0, 0.0))
    bw = jnp.dot(dmat, sorted_s, preferred_element_type=jnp.float32)

    samples_ref[...] = sorted_s.astype(samples_ref.dtype)
    widths_ref[...] = bw.astype(widths_ref.dtype)


def _pick_lane_tile(n_pad):
    for t in (2048, 1024, 512, 256, 128):
        if n_pad % t == 0:
            return t
    return 128  # unreachable: n_pad is always a multiple of 128


# ----------------------------------------------------------------------------
# Wrapper mirroring MixedSamples.forward(last_depth, shape, ref_feat), with the
# AdaptiveBins CNN/transformer replaced by its raw output (see TODO above).
# ----------------------------------------------------------------------------
def mixed_samples_forward(last_depth, shape, adaptive_bins_logits, *, ndepth):
    """last_depth: (B, Dprev) f32 (only [:,0] and [:,-1] are used),
    shape: (H, W),
    adaptive_bins_logits: (B, num_adaptive_bins, H, W) raw regressor output.
    Returns (depth_samples, bin_widths), each (B, ndepth, H, W)."""
    H, W = int(shape[0]), int(shape[1])
    B, na, Hb, Wb = adaptive_bins_logits.shape
    assert (Hb, Wb) == (H, W), "regressor output must match the requested shape"
    nu = ndepth - na
    assert nu > 1, "mixed sampling requires num_uniform_bins > 1"
    # TODO(synk): the mixed=False path (num_uniform_bins == 0, which returns the
    # adaptive bin *edges* as second output) is not implemented.

    N = H * W
    n_pad = ((N + 127) // 128) * 128
    tn = _pick_lane_tile(n_pad)

    bins = adaptive_bins_logits.astype(jnp.float32).reshape(B, na, N)
    if n_pad != N:
        bins = jnp.pad(bins, ((0, 0), (0, 0), (0, n_pad - N)))

    dmin = last_depth[:, 0].astype(jnp.float32).reshape(B, 1, 1)
    drange = (last_depth[:, -1] - last_depth[:, 0]).astype(jnp.float32).reshape(B, 1, 1)

    kern = functools.partial(_mixed_samples_kernel, na=na, nu=nu, eps=0.1)
    D = ndepth

    samples, widths = pl.pallas_call(
        kern,
        out_shape=(jax.ShapeDtypeStruct((B, D, n_pad), jnp.float32),
                   jax.ShapeDtypeStruct((B, D, n_pad), jnp.float32)),
        grid_spec=pltpu.PrefetchScalarGridSpec(
            num_scalar_prefetch=0,
            grid=(B, n_pad // tn),
            in_specs=[
                pl.BlockSpec((pl.Squeezed(), na, tn), lambda b, n: (b, 0, n)),
                pl.BlockSpec((pl.Squeezed(), 1, 1), lambda b, n: (b, 0, 0)),
                pl.BlockSpec((pl.Squeezed(), 1, 1), lambda b, n: (b, 0, 0)),
            ],
            out_specs=(
                pl.BlockSpec((pl.Squeezed(), D, tn), lambda b, n: (b, 0, n)),
                pl.BlockSpec((pl.Squeezed(), D, tn), lambda b, n: (b, 0, n)),
            )),
        compiler_params=pltpu.CompilerParams(
            dimension_semantics=("parallel", "parallel")),
    )(bins, dmin, drange)

    samples = samples[:, :, :N].reshape(B, D, H, W).astype(last_depth.dtype)
    widths = widths[:, :, :N].reshape(B, D, H, W).astype(last_depth.dtype)
    return samples, widths


# ----------------------------------------------------------------------------
# Pure-JAX reference mirroring the PyTorch module line by line.
# ----------------------------------------------------------------------------
def mixed_samples_ref(last_depth, adaptive_bins_logits, ndepth):
    B, na, H, W = adaptive_bins_logits.shape
    nu = ndepth - na
    dmin = last_depth[:, 0]
    dmax = last_depth[:, -1]
    # AdaptiveBins, norm='linear'
    bins = jnp.maximum(adaptive_bins_logits, 0.0) + 0.1
    bins = bins / jnp.sum(bins, axis=1, keepdims=True)
    widths = (dmax - dmin).reshape(B, 1, 1, 1) * bins
    edges = jnp.concatenate(
        [jnp.broadcast_to(dmin.reshape(B, 1, 1, 1), (B, 1, H, W)), widths], axis=1)
    edges = jnp.cumsum(edges, axis=1)
    a_samples = 0.5 * (edges[:, :-1] + edges[:, 1:])
    new_interval = (dmax - dmin) / (nu - 1)
    u = dmin[:, None] + jnp.arange(nu, dtype=last_depth.dtype)[None, :] * new_interval[:, None]
    u = jnp.broadcast_to(u[:, :, None, None], (B, nu, H, W))
    ds = jnp.sort(jnp.concatenate([a_samples, u], axis=1), axis=1)
    bw = ds[:, 1:] - ds[:, :-1]
    bw = jnp.concatenate([bw, bw[:, -1:]], axis=1)
    return ds, bw


if __name__ == "__main__":
    key = jax.random.PRNGKey(0)
    B, H, W = 2, 16, 16
    ndepth = 8
    na = ndepth // 4          # num_adaptive_bins (mixed=True)
    n_prev = 8                # hypotheses in the previous depth range

    k1, k2, k3 = jax.random.split(key, 3)
    dmin_v = 1.0 + 0.5 * jax.random.uniform(k1, (B,), dtype=jnp.float32)
    dmax_v = dmin_v + 1.0 + 0.5 * jax.random.uniform(k2, (B,), dtype=jnp.float32)
    # previous depth-range tensor; only [:, 0] and [:, -1] are consumed.
    last_depth = (dmin_v[:, None]
                  + (dmax_v - dmin_v)[:, None]
                  * jnp.linspace(0.0, 1.0, n_prev, dtype=jnp.float32)[None, :])
    # stand-in for AdaptiveBins.regressor(ref_feat) raw output (see TODO above).
    bins_logits = jax.random.normal(k3, (B, na, H, W), dtype=jnp.float32)

    samples, widths = mixed_samples_forward(last_depth, (H, W), bins_logits,
                                            ndepth=ndepth)
    jax.block_until_ready((samples, widths))

    ref_s, ref_w = mixed_samples_ref(last_depth, bins_logits, ndepth)
    assert samples.shape == (B, ndepth, H, W)
    assert widths.shape == (B, ndepth, H, W)
    np.testing.assert_allclose(np.asarray(samples), np.asarray(ref_s),
                               rtol=1e-4, atol=1e-4)
    np.testing.assert_allclose(np.asarray(widths), np.asarray(ref_w),
                               rtol=1e-4, atol=1e-4)
    print("KERNEL_OK")
</pallas_src>

<mosaic_0001>
module attributes {stable_mosaic.version = 11 : i64} {
  func.func @_mixed_samples_kernel(%arg0: i32, %arg1: i32, %arg2: memref<1x2x256xf32, #tpu.memory_space<vmem>>, %arg3: memref<1x1x1xf32, #tpu.memory_space<vmem>>, %arg4: memref<1x1x1xf32, #tpu.memory_space<vmem>>, %arg5: memref<1x8x256xf32, #tpu.memory_space<vmem>>, %arg6: memref<1x8x256xf32, #tpu.memory_space<vmem>>) attributes {dimension_semantics = [#tpu.dimension_semantics<parallel>, #tpu.dimension_semantics<parallel>], iteration_bounds = array<i64: 2, 1>, scalar_prefetch = 0 : i64, scratch_operands = 0 : i64, tpu.core_type = #tpu.core_type<tc>, window_params = [{transform_indices = @transform_0, window_bounds = array<i64: 1, 2, 256>}, {transform_indices = @transform_1, window_bounds = array<i64: 1, 1, 1>}, {transform_indices = @transform_2, window_bounds = array<i64: 1, 1, 1>}, {transform_indices = @transform_3, window_bounds = array<i64: 1, 8, 256>}, {transform_indices = @transform_4, window_bounds = array<i64: 1, 8, 256>}]} {
    %c0 = arith.constant 0 : index
    %c0_0 = arith.constant 0 : index
    %c0_1 = arith.constant 0 : index
    %0 = vector.load %arg2[%c0, %c0_0, %c0_1] : memref<1x2x256xf32, #tpu.memory_space<vmem>>, vector<1x2x256xf32>
    %1 = vector.shape_cast %0 : vector<1x2x256xf32> to vector<2x256xf32>
    %c0_2 = arith.constant 0 : index
    %c0_3 = arith.constant 0 : index
    %c0_4 = arith.constant 0 : index
    %2 = vector.load %arg3[%c0_2, %c0_3, %c0_4] : memref<1x1x1xf32, #tpu.memory_space<vmem>>, vector<1x1x1xf32>
    %3 = vector.extract %2[0, 0, 0] : f32 from vector<1x1x1xf32>
    %c0_5 = arith.constant 0 : index
    %c0_6 = arith.constant 0 : index
    %c0_7 = arith.constant 0 : index
    %4 = vector.load %arg4[%c0_5, %c0_6, %c0_7] : memref<1x1x1xf32, #tpu.memory_space<vmem>>, vector<1x1x1xf32>
    %5 = vector.extract %4[0, 0, 0] : f32 from vector<1x1x1xf32>
    %cst = arith.constant 0.000000e+00 : f32
    %6 = vector.broadcast %cst : f32 to vector<2x256xf32>
    %7 = arith.maximumf %1, %6 : vector<2x256xf32>
    %cst_8 = arith.constant 1.000000e-01 : f32
    %8 = vector.broadcast %cst_8 : f32 to vector<2x256xf32>
    %9 = arith.addf %7, %8 : vector<2x256xf32>
    %cst_9 = arith.constant dense<0.000000e+00> : vector<256xf32>
    %10 = vector.multi_reduction <add>, %9, %cst_9 [0] : vector<2x256xf32> to vector<256xf32>
    %11 = vector.shape_cast %10 : vector<256xf32> to vector<1x256xf32>
    %12 = vector.broadcast %11 : vector<1x256xf32> to vector<2x256xf32>
    %13 = arith.divf %9, %12 : vector<2x256xf32>
    %14 = vector.broadcast %5 : f32 to vector<2x256xf32>
    %15 = arith.mulf %13, %14 : vector<2x256xf32>
    %cst_10 = arith.constant 0.000000e+00 : f32
    %16 = vector.broadcast %cst_10 : f32 to vector<1x256xf32>
    %17 = vector.extract_strided_slice %15 {offsets = [0, 0], sizes = [1, 256], strides = [1, 1]} : vector<2x256xf32> to vector<1x256xf32>
    %cst_11 = arith.constant 5.000000e-01 : f32
    %18 = vector.broadcast %cst_11 : f32 to vector<1x256xf32>
    %19 = arith.mulf %18, %17 : vector<1x256xf32>
    %20 = arith.addf %16, %19 : vector<1x256xf32>
    %21 = vector.broadcast %3 : f32 to vector<1x256xf32>
    %22 = arith.addf %21, %20 : vector<1x256xf32>
    %23 = arith.addf %16, %17 : vector<1x256xf32>
    %24 = vector.extract_strided_slice %15 {offsets = [1, 0], sizes = [1, 256], strides = [1, 1]} : vector<2x256xf32> to vector<1x256xf32>
    %cst_12 = arith.constant 5.000000e-01 : f32
    %25 = vector.broadcast %cst_12 : f32 to vector<1x256xf32>
    %26 = arith.mulf %25, %24 : vector<1x256xf32>
    %27 = arith.addf %23, %26 : vector<1x256xf32>
    %28 = vector.broadcast %3 : f32 to vector<1x256xf32>
    %29 = arith.addf %28, %27 : vector<1x256xf32>
    %cst_13 = arith.constant 5.000000e+00 : f32
    %30 = arith.divf %5, %cst_13 : f32
    %cst_14 = arith.constant 0.000000e+00 : f32
    %31 = arith.mulf %cst_14, %30 : f32
    %32 = arith.addf %3, %31 : f32
    %cst_15 = arith.constant 1.000000e+00 : f32
    %33 = arith.mulf %cst_15, %30 : f32
    %34 = arith.addf %3, %33 : f32
    %cst_16 = arith.constant 2.000000e+00 : f32
    %35 = arith.mulf %cst_16, %30 : f32
    %36 = arith.addf %3, %35 : f32
    %cst_17 = arith.constant 3.000000e+00 : f32
    %37 = arith.mulf %cst_17, %30 : f32
    %38 = arith.addf %3, %37 : f32
    %cst_18 = arith.constant 4.000000e+00 : f32
    %39 = arith.mulf %cst_18, %30 : f32
    %40 = arith.addf %3, %39 : f32
    %cst_19 = arith.constant 5.000000e+00 : f32
    %41 = arith.mulf %cst_19, %30 : f32
    %42 = arith.addf %3, %41 : f32
    %c0_i32 = arith.constant 0 : i32
    %43 = vector.broadcast %c0_i32 : i32 to vector<1x256xi32>
    %44 = vector.broadcast %32 : f32 to vector<1x256xf32>
    %45 = arith.cmpf olt, %44, %22 : vector<1x256xf32>
    %46 = arith.extui %45 : vector<1x256xi1> to vector<1x256xi32>
    %47 = arith.addi %43, %46 : vector<1x256xi32>
    %48 = vector.broadcast %34 : f32 to vector<1x256xf32>
    %49 = arith.cmpf olt, %48, %22 : vector<1x256xf32>
    %50 = arith.extui %49 : vector<1x256xi1> to vector<1x256xi32>
    %51 = arith.addi %47, %50 : vector<1x256xi32>
    %52 = vector.broadcast %36 : f32 to vector<1x256xf32>
    %53 = arith.cmpf olt, %52, %22 : vector<1x256xf32>
    %54 = arith.extui %53 : vector<1x256xi1> to vector<1x256xi32>
    %55 = arith.addi %51, %54 : vector<1x256xi32>
    %56 = vector.broadcast %38 : f32 to vector<1x256xf32>
    %57 = arith.cmpf olt, %56, %22 : vector<1x256xf32>
    %58 = arith.extui %57 : vector<1x256xi1> to vector<1x256xi32>
    %59 = arith.addi %55, %58 : vector<1x256xi32>
    %60 = vector.broadcast %40 : f32 to vector<1x256xf32>
    %61 = arith.cmpf olt, %60, %22 : vector<1x256xf32>
    %62 = arith.extui %61 : vector<1x256xi1> to vector<1x256xi32>
    %63 = arith.addi %59, %62 : vector<1x256xi32>
    %64 = vector.broadcast %42 : f32 to vector<1x256xf32>
    %65 = arith.cmpf olt, %64, %22 : vector<1x256xf32>
    %66 = arith.extui %65 : vector<1x256xi1> to vector<1x256xi32>
    %67 = arith.addi %63, %66 : vector<1x256xi32>
    %c1_i32 = arith.constant 1 : i32
    %68 = vector.broadcast %c1_i32 : i32 to vector<1x256xi32>
    %69 = vector.broadcast %32 : f32 to vector<1x256xf32>
    %70 = arith.cmpf olt, %69, %29 : vector<1x256xf32>
    %71 = arith.extui %70 : vector<1x256xi1> to vector<1x256xi32>
    %72 = arith.addi %68, %71 : vector<1x256xi32>
    %73 = vector.broadcast %34 : f32 to vector<1x256xf32>
    %74 = arith.cmpf olt, %73, %29 : vector<1x256xf32>
    %75 = arith.extui %74 : vector<1x256xi1> to vector<1x256xi32>
    %76 = arith.addi %72, %75 : vector<1x256xi32>
    %77 = vector.broadcast %36 : f32 to vector<1x256xf32>
    %78 = arith.cmpf olt, %77, %29 : vector<1x256xf32>
    %79 = arith.extui %78 : vector<1x256xi1> to vector<1x256xi32>
    %80 = arith.addi %76, %79 : vector<1x256xi32>
    %81 = vector.broadcast %38 : f32 to vector<1x256xf32>
    %82 = arith.cmpf olt, %81, %29 : vector<1x256xf32>
    %83 = arith.extui %82 : vector<1x256xi1> to vector<1x256xi32>
    %84 = arith.addi %80, %83 : vector<1x256xi32>
    %85 = vector.broadcast %40 : f32 to vector<1x256xf32>
    %86 = arith.cmpf olt, %85, %29 : vector<1x256xf32>
    %87 = arith.extui %86 : vector<1x256xi1> to vector<1x256xi32>
    %88 = arith.addi %84, %87 : vector<1x256xi32>
    %89 = vector.broadcast %42 : f32 to vector<1x256xf32>
    %90 = arith.cmpf olt, %89, %29 : vector<1x256xf32>
    %91 = arith.extui %90 : vector<1x256xi1> to vector<1x256xi32>
    %92 = arith.addi %88, %91 : vector<1x256xi32>
    %c0_i32_20 = arith.constant 0 : i32
    %93 = vector.broadcast %c0_i32_20 : i32 to vector<1x256xi32>
    %94 = vector.broadcast %32 : f32 to vector<1x256xf32>
    %95 = arith.cmpf ole, %22, %94 : vector<1x256xf32>
    %96 = arith.extui %95 : vector<1x256xi1> to vector<1x256xi32>
    %97 = arith.addi %93, %96 : vector<1x256xi32>
    %98 = vector.broadcast %32 : f32 to vector<1x256xf32>
    %99 = arith.cmpf ole, %29, %98 : vector<1x256xf32>
    %100 = arith.extui %99 : vector<1x256xi1> to vector<1x256xi32>
    %101 = arith.addi %97, %100 : vector<1x256xi32>
    %c1_i32_21 = arith.constant 1 : i32
    %102 = vector.broadcast %c1_i32_21 : i32 to vector<1x256xi32>
    %103 = vector.broadcast %34 : f32 to vector<1x256xf32>
    %104 = arith.cmpf ole, %22, %103 : vector<1x256xf32>
    %105 = arith.extui %104 : vector<1x256xi1> to vector<1x256xi32>
    %106 = arith.addi %102, %105 : vector<1x256xi32>
    %107 = vector.broadcast %34 : f32 to vector<1x256xf32>
    %108 = arith.cmpf ole, %29, %107 : vector<1x256xf32>
    %109 = arith.extui %108 : vector<1x256xi1> to vector<1x256xi32>
    %110 = arith.addi %106, %109 : vector<1x256xi32>
    %c2_i32 = arith.constant 2 : i32
    %111 = vector.broadcast %c2_i32 : i32 to vector<1x256xi32>
    %112 = vector.broadcast %36 : f32 to vector<1x256xf32>
    %113 = arith.cmpf ole, %22, %112 : vector<1x256xf32>
    %114 = arith.extui %113 : vector<1x256xi1> to vector<1x256xi32>
    %115 = arith.addi %111, %114 : vector<1x256xi32>
    %116 = vector.broadcast %36 : f32 to vector<1x256xf32>
    %117 = arith.cmpf ole, %29, %116 : vector<1x256xf32>
    %118 = arith.extui %117 : vector<1x256xi1> to vector<1x256xi32>
    %119 = arith.addi %115, %118 : vector<1x256xi32>
    %c3_i32 = arith.constant 3 : i32
    %120 = vector.broadcast %c3_i32 : i32 to vector<1x256xi32>
    %121 = vector.broadcast %38 : f32 to vector<1x256xf32>
    %122 = arith.cmpf ole, %22, %121 : vector<1x256xf32>
    %123 = arith.extui %122 : vector<1x256xi1> to vector<1x256xi32>
    %124 = arith.addi %120, %123 : vector<1x256xi32>
    %125 = vector.broadcast %38 : f32 to vector<1x256xf32>
    %126 = arith.cmpf ole, %29, %125 : vector<1x256xf32>
    %127 = arith.extui %126 : vector<1x256xi1> to vector<1x256xi32>
    %128 = arith.addi %124, %127 : vector<1x256xi32>
    %c4_i32 = arith.constant 4 : i32
    %129 = vector.broadcast %c4_i32 : i32 to vector<1x256xi32>
    %130 = vector.broadcast %40 : f32 to vector<1x256xf32>
    %131 = arith.cmpf ole, %22, %130 : vector<1x256xf32>
    %132 = arith.extui %131 : vector<1x256xi1> to vector<1x256xi32>
    %133 = arith.addi %129, %132 : vector<1x256xi32>
    %134 = vector.broadcast %40 : f32 to vector<1x256xf32>
    %135 = arith.cmpf ole, %29, %134 : vector<1x256xf32>
    %136 = arith.extui %135 : vector<1x256xi1> to vector<1x256xi32>
    %137 = arith.addi %133, %136 : vector<1x256xi32>
    %c5_i32 = arith.constant 5 : i32
    %138 = vector.broadcast %c5_i32 : i32 to vector<1x256xi32>
    %139 = vector.broadcast %42 : f32 to vector<1x256xf32>
    %140 = arith.cmpf ole, %22, %139 : vector<1x256xf32>
    %141 = arith.extui %140 : vector<1x256xi1> to vector<1x256xi32>
    %142 = arith.addi %138, %141 : vector<1x256xi32>
    %143 = vector.broadcast %42 : f32 to vector<1x256xf32>
    %144 = arith.cmpf ole, %29, %143 : vector<1x256xf32>
    %145 = arith.extui %144 : vector<1x256xi1> to vector<1x256xi32>
    %146 = arith.addi %142, %145 : vector<1x256xi32>
    %147 = tpu.iota {dimensions = array<i32: 0>} : vector<8x256xi32>
    %cst_22 = arith.constant 0.000000e+00 : f32
    %148 = vector.broadcast %cst_22 : f32 to vector<8x256xf32>
    %149 = vector.broadcast %67 : vector<1x256xi32> to vector<8x256xi32>
    %150 = arith.cmpi eq, %147, %149 : vector<8x256xi32>
    %cst_23 = arith.constant 0.000000e+00 : f32
    %151 = vector.shape_cast %22 : vector<1x256xf32> to vector<1x256xf32>
    %152 = vector.broadcast %151 : vector<1x256xf32> to vector<8x256xf32>
    %153 = vector.broadcast %cst_23 : f32 to vector<8x256xf32>
    %154 = arith.select %150, %152, %153 : vector<8x256xi1>, vector<8x256xf32>
    %155 = arith.addf %148, %154 : vector<8x256xf32>
    %156 = vector.broadcast %92 : vector<1x256xi32> to vector<8x256xi32>
    %157 = arith.cmpi eq, %147, %156 : vector<8x256xi32>
    %cst_24 = arith.constant 0.000000e+00 : f32
    %158 = vector.shape_cast %29 : vector<1x256xf32> to vector<1x256xf32>
    %159 = vector.broadcast %158 : vector<1x256xf32> to vector<8x256xf32>
    %160 = vector.broadcast %cst_24 : f32 to vector<8x256xf32>
    %161 = arith.select %157, %159, %160 : vector<8x256xi1>, vector<8x256xf32>
    %162 = arith.addf %155, %161 : vector<8x256xf32>
    %163 = vector.broadcast %101 : vector<1x256xi32> to vector<8x256xi32>
    %164 = arith.cmpi eq, %147, %163 : vector<8x256xi32>
    %cst_25 = arith.constant 0.000000e+00 : f32
    %165 = vector.broadcast %32 : f32 to vector<8x256xf32>
    %166 = vector.broadcast %cst_25 : f32 to vector<8x256xf32>
    %167 = arith.select %164, %165, %166 : vector<8x256xi1>, vector<8x256xf32>
    %168 = arith.addf %162, %167 : vector<8x256xf32>
    %169 = vector.broadcast %110 : vector<1x256xi32> to vector<8x256xi32>
    %170 = arith.cmpi eq, %147, %169 : vector<8x256xi32>
    %cst_26 = arith.constant 0.000000e+00 : f32
    %171 = vector.broadcast %34 : f32 to vector<8x256xf32>
    %172 = vector.broadcast %cst_26 : f32 to vector<8x256xf32>
    %173 = arith.select %170, %171, %172 : vector<8x256xi1>, vector<8x256xf32>
    %174 = arith.addf %168, %173 : vector<8x256xf32>
    %175 = vector.broadcast %119 : vector<1x256xi32> to vector<8x256xi32>
    %176 = arith.cmpi eq, %147, %175 : vector<8x256xi32>
    %cst_27 = arith.constant 0.000000e+00 : f32
    %177 = vector.broadcast %36 : f32 to vector<8x256xf32>
    %178 = vector.broadcast %cst_27 : f32 to vector<8x256xf32>
    %179 = arith.select %176, %177, %178 : vector<8x256xi1>, vector<8x256xf32>
    %180 = arith.addf %174, %179 : vector<8x256xf32>
    %181 = vector.broadcast %128 : vector<1x256xi32> to vector<8x256xi32>
    %182 = arith.cmpi eq, %147, %181 : vector<8x256xi32>
    %cst_28 = arith.constant 0.000000e+00 : f32
    %183 = vector.broadcast %38 : f32 to vector<8x256xf32>
    %184 = vector.broadcast %cst_28 : f32 to vector<8x256xf32>
    %185 = arith.select %182, %183, %184 : vector<8x256xi1>, vector<8x256xf32>
    %186 = arith.addf %180, %185 : vector<8x256xf32>
    %187 = vector.broadcast %137 : vector<1x256xi32> to vector<8x256xi32>
    %188 = arith.cmpi eq, %147, %187 : vector<8x256xi32>
    %cst_29 = arith.constant 0.000000e+00 : f32
    %189 = vector.broadcast %40 : f32 to vector<8x256xf32>
    %190 = vector.broadcast %cst_29 : f32 to vector<8x256xf32>
    %191 = arith.select %188, %189, %190 : vector<8x256xi1>, vector<8x256xf32>
    %192 = arith.addf %186, %191 : vector<8x256xf32>
    %193 = vector.broadcast %146 : vector<1x256xi32> to vector<8x256xi32>
    %194 = arith.cmpi eq, %147, %193 : vector<8x256xi32>
    %cst_30 = arith.constant 0.000000e+00 : f32
    %195 = vector.broadcast %42 : f32 to vector<8x256xf32>
    %196 = vector.broadcast %cst_30 : f32 to vector<8x256xf32>
    %197 = arith.select %194, %195, %196 : vector<8x256xi1>, vector<8x256xf32>
    %198 = arith.addf %192, %197 : vector<8x256xf32>
    %199 = tpu.iota {dimensions = array<i32: 0>} : vector<8x8xi32>
    %200 = tpu.iota {dimensions = array<i32: 1>} : vector<8x8xi32>
    %c1_i32_31 = arith.constant 1 : i32
    %201 = vector.broadcast %c1_i32_31 : i32 to vector<8x8xi32>
    %202 = arith.addi %199, %201 : vector<8x8xi32>
    %c7_i32 = arith.constant 7 : i32
    %203 = vector.broadcast %c7_i32 : i32 to vector<8x8xi32>
    %204 = arith.minsi %202, %203 : vector<8x8xi32>
    %c6_i32 = arith.constant 6 : i32
    %205 = vector.broadcast %c6_i32 : i32 to vector<8x8xi32>
    %206 = arith.minsi %199, %205 : vector<8x8xi32>
    %207 = arith.cmpi eq, %200, %204 : vector<8x8xi32>
    %cst_32 = arith.constant 1.000000e+00 : f32
    %cst_33 = arith.constant 0.000000e+00 : f32
    %208 = vector.broadcast %cst_32 : f32 to vector<8x8xf32>
    %209 = vector.broadcast %cst_33 : f32 to vector<8x8xf32>
    %210 = arith.select %207, %208, %209 : vector<8x8xi1>, vector<8x8xf32>
    %211 = arith.cmpi eq, %200, %206 : vector<8x8xi32>
    %cst_34 = arith.constant 1.000000e+00 : f32
    %cst_35 = arith.constant 0.000000e+00 : f32
    %212 = vector.broadcast %cst_34 : f32 to vector<8x8xf32>
    %213 = vector.broadcast %cst_35 : f32 to vector<8x8xf32>
    %214 = arith.select %211, %212, %213 : vector<8x8xi1>, vector<8x8xf32>
    %215 = arith.subf %210, %214 : vector<8x8xf32>
    %cst_36 = arith.constant dense<0.000000e+00> : vector<8x256xf32>
    %216 = tpu.matmul %215, %198, %cst_36 {dimension_numbers = #tpu.dot_dimension_numbers<[1], [0], [0], [1], [0, 0, 1, 1], [], []>} : vector<8x8xf32>, vector<8x256xf32>, vector<8x256xf32> -> vector<8x256xf32>
    %c0_37 = arith.constant 0 : index
    %c0_38 = arith.constant 0 : index
    %c0_39 = arith.constant 0 : index
    %217 = vector.load %arg5[%c0_37, %c0_38, %c0_39] : memref<1x8x256xf32, #tpu.memory_space<vmem>>, vector<1x8x256xf32>
    %218 = vector.shape_cast %217 : vector<1x8x256xf32> to vector<8x256xf32>
    %219 = vector.shape_cast %198 : vector<8x256xf32> to vector<1x8x256xf32>
    tpu.vector_store %arg5[%c0_37, %c0_38, %c0_39], %219 {strides = array<i32>} : memref<1x8x256xf32, #tpu.memory_space<vmem>>, vector<1x8x256xf32>,
    %c0_40 = arith.constant 0 : index
    %c0_41 = arith.constant 0 : index
    %c0_42 = arith.constant 0 : index
    %220 = vector.load %arg6[%c0_40, %c0_41, %c0_42] : memref<1x8x256xf32, #tpu.memory_space<vmem>>, vector<1x8x256xf32>
    %221 = vector.shape_cast %220 : vector<1x8x256xf32> to vector<8x256xf32>
    %222 = vector.shape_cast %216 : vector<8x256xf32> to vector<1x8x256xf32>
    tpu.vector_store %arg6[%c0_40, %c0_41, %c0_42], %222 {strides = array<i32>} : memref<1x8x256xf32, #tpu.memory_space<vmem>>, vector<1x8x256xf32>,
    return
  }
  func.func @transform_0(%arg0: i32, %arg1: i32) -> (i32, i32, i32) {
    %c0_i32 = arith.constant 0 : i32
    %c0_i32_0 = arith.constant 0 : i32
    return %arg0, %c0_i32, %arg1 : i32, i32, i32
  }
  func.func @transform_1(%arg0: i32, %arg1: i32) -> (i32, i32, i32) {
    %c0_i32 = arith.constant 0 : i32
    %c0_i32_0 = arith.constant 0 : i32
    %c0_i32_1 = arith.constant 0 : i32
    return %arg0, %c0_i32, %c0_i32_0 : i32, i32, i32
  }
  func.func @transform_2(%arg0: i32, %arg1: i32) -> (i32, i32, i32) {
    %c0_i32 = arith.constant 0 : i32
    %c0_i32_0 = arith.constant 0 : i32
    %c0_i32_1 = arith.constant 0 : i32
    return %arg0, %c0_i32, %c0_i32_0 : i32, i32, i32
  }
  func.func @transform_3(%arg0: i32, %arg1: i32) -> (i32, i32, i32) {
    %c0_i32 = arith.constant 0 : i32
    %c0_i32_0 = arith.constant 0 : i32
    return %arg0, %c0_i32, %arg1 : i32, i32, i32
  }
  func.func @transform_4(%arg0: i32, %arg1: i32) -> (i32, i32, i32) {
    %c0_i32 = arith.constant 0 : i32
    %c0_i32_0 = arith.constant 0 : i32
    return %arg0, %c0_i32, %arg1 : i32, i32, i32
  }
}

</mosaic_0001>

<bundles_post_ra>
// kernel: tpu_custom_call.1
= control target key start
LH: loop header
LB: loop body
LE: loop exit
PB: predicated region body
PF: predicated region fallthrough
CT: control target
= control target key end

     0   :  { %10 = vsyncpa [#allocation3], 0  ;;  %s1618_s0 = inlined_call_operand.hbm [shape: f32[2,2,256], index: 0, kind: input, shape index: {}]   ;;  %s1619_s1 = inlined_call_operand.vmem [shape: f32[2,1,1], index: 1, kind: input, shape index: {}]   ;;  %s1620_s2 = inlined_call_operand.vmem [shape: f32[2,1,1], index: 2, kind: input, shape index: {}]   ;;  %s1621_s3 = inlined_call_operand.hbm [shape: f32[2,8,256], index: 3, kind: output, shape index: {0}]   ;;  %s1622_s4 = inlined_call_operand.hbm [shape: f32[2,8,256], index: 4, kind: output, shape index: {1}]  }
   0x1   :  { %12 = vsyncpa [#allocation3 + $0x1], 0 }
   0x2   :  { %13 = vsyncpa [#allocation4], 0 }
   0x3   :  { %15 = vsyncpa [#allocation4 + $0x1], 0 }
   0x4   :  { %16 = vsyncpa [#allocation7], 0 }
   0x5   :  { %18 = vsyncpa [#allocation7 + $0x1], 0  ;;  %s1184_s15 = smov 0   ;;  %s1186_s16 = smov 0  }
   0x6   :  { %s1188_s17 = smov 0   ;;  %s1190_s18 = smov 0  }
   0x7   :  { %s1192_s19 = smov 0   ;;  %s1194_s20 = smov 0  }
   0x8 LB: > { %s907_s21 = sadd.s32 4294967295, %s1151_s20   ;;  %s908_s22 = sadd.s32 4294967294, %s1151_s20   ;;  %s1151_s20 = sphi %s1194_s20, %s24_s20   ;;  %s1147_s19 = sphi %s1192_s19, %s1638_s19   ;;  %s1143_s18 = sphi %s1190_s18, %s1637_s18   ;;  %s1139_s17 = sphi %s1188_s17, %s1636_s17   ;;  %s1135_s16 = sphi %s1186_s16, %s1635_s16   ;;  %s1131_s15 = sphi %s1184_s15, %s1634_s15  }
   0x9   : > { %s36_s23 = sadd.s32 1, %s1147_s19  ;;  %s45_s24 = sadd.s32 1, %s1139_s17 }
   0xa   : > { %p38_p0 = scmp.ge.s32.totalorder %s36_s23, 2  ;;  %p52_p1 = scmp.ne.s32.totalorder %s1139_s17, %s1135_s16 }
   0xb   : > { %p53_p2 = scmp.eq.s32.totalorder %s1151_s20, 0  ;;  %p58_p3 = scmp.ne.s32.totalorder %s1135_s16, %s1131_s15 }
   0xc   : > { %s1640_s23 = smov (%p38_p0, %s36_s23), 0  ;;  %p59_p5 = scmp.eq.s32.totalorder %s907_s21, 0 }
   0xd   : > { %p1225_p4 = por %p53_p2, %p52_p1  ;;  %s40_s26 = ssub.s32 %s1147_s19, %s1640_s23 }
   0xe   : > { %p136_p6 = scmp.eq.s32.totalorder %s907_s21, 1  ;;  %p43_p7 = scmp.eq.s32.totalorder %s40_s26, 0 }
   0xf   : > { %p1231_p8 = por %p59_p5, %p58_p3  ;;  %p142_p10 = scmp.eq.s32.totalorder %s908_s22, 1 }
  0x10   : > { %p1235_p9 = por %p136_p6, %p52_p1  ;;  %p952_p13 = scmp.lt.s32.totalorder %s1151_s20, 2 }
  0x11   : > { %s1240_s29 = scalar_select %p43_p7, %s1139_s17, %s45_s24  }
  0x12   : > { %s1626_s28 = scalar_select %p1235_p9, 1, 0 }
  0x13   : > { %p1242_p11 = por %p142_p10, %p58_p3  ;;  %s190_s5 = sand.u32 1, %s1139_s17  }
  0x14   : > { %s911_s6 = sshll.u32 %s190_s5, 2  ;;  %s928_s7 = sshll.u32 %s1147_s19, 6 }
  0x15   : > { %s1627_s30 = scalar_select %p1242_p11, 1, 0 }
  0x16   : > { %s1253_s10 = scalar_lea.hbm %s1618_s0, %s928_s7  ;;  %s194_s11 = scalar_lea.vmem [#allocation2], %s911_s6 }
  0x17   : > { %s204_s12 = sshll.u32 %s194_s11, 4  ;;  %p1259_p0 = pnand %p952_p13, %p1225_p4  ;;  %s1255_s12 = int_to_ptr.vmem [resolvable:$true] %s204_s12 }
  0x18   : > { %s191_s14 = scalar_lea.sflag [#allocation3], %s190_s5  ;;  %s1007_s21 = scalar_lea.hbm %s1253_s10, 64 }
  0x19   : > { %p1008_p3 = scmp.ne.s32.totalorder %s1253_s10, %s1007_s21  ;;  %p1009_p5 = pneg %p1259_p0 }
  0x1a   : > { %s1012_s25 = scalar_lea.hbm %s1618_s0, 128  ;;  %p1013_p4 = scmp.lt.u32.totalorder %s1253_s10, %s1618_s0 }
  0x1b   : > { %p1010_p6 = pnand %p1009_p5, %p1008_p3  ;;  %p1014_p10 = scmp.lt.u32.totalorder %s1012_s25, %s1007_s21 }
  0x1c   : > { %p1016_p12 = scmp.lt.u32.totalorder %s1007_s21, %s1253_s10 }
  0x1d   : > { %p1011_p7 = pneg %p1010_p6  ;;  %p1015_p13 = por %p1014_p10, %p1013_p4 }
  0x1f   : > { %p1017_p1 = por %p1016_p12, %p1015_p13 }
  0x21   : > { %p1018_p2 = pnand %p1017_p1, %p1011_p7 }
  0x23   : > { %1021 = shalt.err (!%p1018_p2)
}
  0x24   : > { %s1022_s5 = scalar_lea.vmem %s1255_s12, 64  ;;  %s1153_s7 = smov [#allocation2]  }
  0x25   : > { %p1023_p3 = scmp.ne.s32.totalorder %s1255_s12, %s1022_s5  ;;  %s1027_s8 = sshll.u32 %s1153_s7, 4  ;;  %s1028_s8 = int_to_ptr.vmem [resolvable:$false] %s1027_s8 }
  0x26   : > { %s1029_s9 = scalar_lea.vmem %s1028_s8, 128  ;;  %p1030_p9 = scmp.lt.s32.totalorder %s1255_s12, %s1028_s8 }
  0x27   : > { %p1025_p6 = pnand %p1023_p3, %p1009_p5  ;;  %p1031_p4 = scmp.lt.s32.totalorder %s1029_s9, %s1022_s5 }
  0x29   : > { %p1026_p11 = pneg %p1025_p6  ;;  %p1032_p10 = por %p1031_p4, %p1030_p9 }
  0x2b   : > { %p1033_p12 = pnand %p1032_p10, %p1026_p11 }
  0x2d   : > { %1036 = shalt.err (!%p1033_p12)
}
  0x2e   : > { %944 = dma.hbm_to_vmem [thread:$0]  (!%p1259_p0), %s1253_s10, 64, %s1255_s12, %s191_s14  }
  0x2f   : > { %p1629_p1 = scmp.lt.s32.totalorder %s1151_s20, 3  ;;  %p1630_p2 = scmp.ge.s32.totalorder %s1151_s20, 1 }
  0x31   : > { %p222_p5 = pnand %p1630_p2, %p1629_p1 }
  0x32   : > { %s1295_s11 = sand.u32 (!%p222_p5), 1, %s1135_s16  }
  0x33   : > { %225 = sbr.rel (%p222_p5) target bundleno = 399 (0x18f), region = 32  ;;  %s915_s21 = sshll.u32 (!%p222_p5), %s1295_s11, 2 }
  0x34   : > { %s228_s22 = scalar_lea.sflag (!%p222_p5), [#allocation3], %s1295_s11  ;;  %s231_s24 = scalar_lea.vmem (!%p222_p5), [#allocation2], %s915_s21 }
  0x3a   : > { %1118 = dma.done.wait (%p1231_p8), %s228_s22, 64  }
  0x3b   : > { %1120 = vsyncadd (%p1231_p8), %s228_s22, 4294967232  ;;  %p268_p9 = scmp.lt.s32.totalorder %s1143_s18, 1  ;;  %v287_v0 = vlaneseq  ;;  %v1154_v1 = vmov 1983009808   ;;  %v1155_v5 = vmov 0.0   ;;  %vm294_vm4 = vcmask 1041408  }
  0x3c   : > { %v285_v2 = vunpack.c.l.s4 %v1154_v1  ;;  %721 = vmatprep.mubr.f32.mxu0 %v1155_v5  ;;  %v276_v11 = vld [vmem:[%s231_s24] sm:$0xf]  ;;  %v1156_v51 = vmov 0   ;;  %p1631_p11 = scmp.ne.s32.totalorder %s1626_s28, 0 }
  0x3d   : > { %s269_s10 = scalar_select %p268_p9, %s1143_s18, 1  ;;  %v1305_v3 = vshrl.u32 %v287_v0, 7  ;;  %v642_v4 = vand.u32 127, %v287_v0  ;;  %v281_v12 = vmax.f32 %v276_v11, 0.0 }
  0x3e   : > { %v286_v6 = vunpack.c.0.s8 %v285_v2 }
  0x3f   : > { %s270_s14 = scalar_lea.vmem %s1619_s1, %s269_s10  ;;  %s273_s27 = scalar_lea.vmem %s1620_s2, %s269_s10  ;;  %v643_v7 = vadd.s32 1, %v1305_v3  ;;  %vm646_vm0 = vcmp.lt.s32.totalorder %v1305_v3, 6  ;;  %v282_v16 = vadd.f32 0.1, %v281_v12  ;;  %v1337_v47 = vsub.s32 0, %v1305_v3 }
  0x40   : > { %v647_v8 = vsel %vm646_vm0, %v1305_v3, 6  ;;  %v277_v9 = vld [vmem:[%s270_s14] sm:$0x1]  ;;  %v289_v13 = vsub.s32 %v286_v6, %v1305_v3  ;;  %v1340_v48 = vsub.s32 2, %v1305_v3 }
  0x41   : > { %vm644_vm1 = vcmp.lt.s32.totalorder %v643_v7, 7  ;;  %vm650_vm2 = vcmp.eq.s32.totalorder %v642_v4, %v647_v8  ;;  %v279_v10 = vld [vmem:[%s273_s27] sm:$0x1]  ;;  %931 = vpush %v277_v9  ;;  %s916_s27 = sshll.u32 %s1295_s11, 4 }
  0x42   : > { %v645_v14 = vsel %vm644_vm1, %v643_v7, 7  ;;  %v1317_v15 = vsel %vm650_vm2, 1.0, %v1155_v5  ;;  %933 = vpush %v279_v10  ;;  %v290_v19 = vrot.slane %v282_v16, %v289_v13 }
  0x43   : > { %vm648_vm3 = vcmp.eq.s32.totalorder %v642_v4, %v645_v14 }
  0x44   : > { %v1319_v17 = vsel %vm648_vm3, 1.0, %v1155_v5  ;;  %v291_v20 = vcombine.high %v290_v19, %v290_v19  ;;  %v295_v21 = vsel %vm294_vm4, %v290_v19, 0.0 }
  0x45   : > { %v652_v18 = vsub.f32 %v1319_v17, %v1317_v15  ;;  %v296_v22 = vrot.slane %v295_v21, 4 }
  0x46   : > { %v302_v23 = vsel %vm294_vm4, %v291_v20, 0.0 }
  0x47   : > { %v297_v24 = vadd.f32 %v296_v22, %v295_v21  ;;  %v303_v25 = vrot.slane %v302_v23, 4 }
  0x49   : > { %v298_v26 = vrot.slane %v297_v24, 2  ;;  %v304_v27 = vadd.f32 %v303_v25, %v302_v23 }
  0x4b   : > { %v305_v28 = vrot.slane %v304_v27, 2  ;;  %v299_v29 = vadd.f32 %v298_v26, %v297_v24 }
  0x4d   : > { %v306_v30 = vadd.f32 %v305_v28, %v304_v27  ;;  %v300_v31 = vrot.slane %v299_v29, 1 }
  0x4f   : > { %v307_v32 = vrot.slane %v306_v30, 1  ;;  %v301_v33 = vadd.f32 %v300_v31, %v299_v29 }
  0x51   : > { %v308_v34 = vadd.f32 %v307_v32, %v306_v30 }
  0x53   : > { %v311_v35 = vcombine.low %v301_v33, %v308_v34 }
  0x55   : > { %v318_v36 = vrot.slane %v311_v35, %v289_v13 }
  0x57   : > { %1005 = vrcp.f32 %v318_v36 }
  0x61   : > { %v1006_v37 = vpop.eup %1005 }
  0x62   : > { %v321_v38 = vmul.f32 %v1006_v37, %v282_v16 }
  0x72   : > { %s1323_s6 = spop %931 }
  0x73   : > { %s934_s5 = spop %933  ;;  %v326_v42 = vstv %s1323_s6 }
  0x74   : > { %v322_v39 = vstv %s934_s5  ;;  %s337_s7 = smul.f32 0.2, %s934_s5 }
  0x75   : > { %v323_v40 = vmul.f32 %v322_v39, %v321_v38 }
  0x76   : > { %s338_s8 = smul.f32 0.0, %s337_s7  ;;  %s340_s9 = sadd.f32 %s1323_s6, %s337_s7 }
  0x77   : > { %v324_v41 = vmul.f32 0.5, %v323_v40  ;;  %s341_s21 = smul.f32 2.0, %s337_s7 }
  0x78   : > { %s339_s22 = sadd.f32 %s1323_s6, %s338_s8  ;;  %s343_s24 = smul.f32 3.0, %s337_s7  ;;  %v1333_v46 = vstv %s340_s9 }
  0x79   : > { %v1328_v43 = vadd.f32 %v326_v42, %v324_v41  ;;  %v918_v44 = vrot.slane %v324_v41, 9  ;;  %s342_s10 = sadd.f32 %s1323_s6, %s341_s21  ;;  %s345_s12 = smul.f32 4.0, %s337_s7 }
  0x7a   : > { %v1331_v45 = vstv %s339_s22  ;;  %s344_s13 = sadd.f32 %s1323_s6, %s343_s24  ;;  %s347_s14 = smul.f32 5.0, %s337_s7 }
  0x7b   : > { %v333_v49 = vadd.f32 %v918_v44, %v323_v40  ;;  %vm350_vm5 = vcmp.lt.f32.partialorder %v1331_v45, %v1328_v43  ;;  %vm353_vm6 = vcmp.lt.f32.partialorder %v1333_v46, %v1328_v43  ;;  %s346_s25 = sadd.f32 %s1323_s6, %s345_s12  ;;  %v1347_v50 = vstv %s342_s10  ;;  %s929_s7 = sshll.u32 %s1143_s18, 8 }
  0x7c   : > { %v354_v52 = vsel %vm353_vm6, 1, %v1156_v51  ;;  %s348_s26 = sadd.f32 %s1323_s6, %s347_s14  ;;  %v351_v53 = vsel %vm350_vm5, 1, %v1156_v51  ;;  %vm357_vm7 = vcmp.lt.f32.partialorder %v1347_v50, %v1328_v43  ;;  %v1354_v54 = vstv %s344_s13  ;;  %s259_s6 = scalar_lea.vmem [#allocation5], %s916_s27 }
  0x7d   : > { %v1356_v55 = vadd.f32 %v333_v49, %v326_v42  ;;  %v355_v56 = vadd.s32 %v354_v52, %v351_v53  ;;  %v358_v57 = vsel %vm357_vm7, 1, %v1156_v51  ;;  %vm361_vm8 = vcmp.lt.f32.partialorder %v1354_v54, %v1328_v43  ;;  %s754_s5 = sshll.u32 %s259_s6, 4  ;;  %s752_s21 = scalar_lea.hbm %s1621_s3, %s929_s7  ;;  %s1538_s5 = int_to_ptr.vmem [resolvable:$true] %s754_s5 }
  0x7e   : > { %v362_v58 = vsel %vm361_vm8, 1, %v1156_v51  ;;  %v1362_v59 = vstv %s346_s25  ;;  %v1364_v60 = vstv %s348_s26  ;;  %vm390_vm9 = vcmp.le.f32.partialorder %v1328_v43, %v1331_v45  ;;  %s733_s22 = scalar_lea.sflag [#allocation4], %s1295_s11  ;;  %s1037_s24 = scalar_lea.vmem %s1538_s5, 256 }
  0x7f   : > { %vm372_vm10 = vcmp.lt.f32.partialorder %v1331_v45, %v1356_v55  ;;  %vm375_vm11 = vcmp.lt.f32.partialorder %v1333_v46, %v1356_v55  ;;  %v359_v61 = vadd.s32 %v358_v57, %v355_v56  ;;  %vm365_vm12 = vcmp.lt.f32.partialorder %v1362_v59, %v1328_v43  ;;  %p1038_p8 = scmp.ne.s32.totalorder %s1538_s5, %s1037_s24  ;;  %s1157_s10 = smov [#allocation5]  }
  0x80   : > { %v373_v62 = vsel %vm372_vm10, 1, %v1156_v51  ;;  %v376_v63 = vsel %vm375_vm11, 1, %v1156_v51  ;;  %v366_v0 = vsel %vm365_vm12, 1, %v1156_v51  ;;  %vm369_vm13 = vcmp.lt.f32.partialorder %v1364_v60, %v1328_v43  ;;  %s1041_s12 = sshll.u32 %s1157_s10, 4  ;;  %s1042_s12 = int_to_ptr.vmem [resolvable:$false] %s1041_s12 }
  0x81   : > { %v374_v1 = vadd.s32 1, %v373_v62  ;;  %v363_v2 = vadd.s32 %v362_v58, %v359_v61  ;;  %v370_v4 = vsel %vm369_vm13, 1, %v1156_v51  ;;  %vm378_vm14 = vcmp.lt.f32.partialorder %v1347_v50, %v1356_v55  ;;  %p1039_p0 = pnand %p1038_p8, %p1631_p11  ;;  %s1043_s13 = scalar_lea.vmem %s1042_s12, 512 }
  0x82   : > { %v379_v5 = vsel %vm378_vm14, 1, %v1156_v51  ;;  %vm381_vm15 = vcmp.lt.f32.partialorder %v1354_v54, %v1356_v55  ;;  %vm384_vm0 = vcmp.lt.f32.partialorder %v1362_v59, %v1356_v55  ;;  %vm387_vm1 = vcmp.lt.f32.partialorder %v1364_v60, %v1356_v55  ;;  %p1044_p13 = scmp.lt.s32.totalorder %s1538_s5, %s1042_s12  ;;  %p1045_p3 = scmp.lt.s32.totalorder %s1043_s13, %s1037_s24 }
  0x83   : > { %v367_v6 = vadd.s32 %v366_v0, %v363_v2  ;;  %v377_v7 = vadd.s32 %v376_v63, %v374_v1  ;;  %v382_v8 = vsel %vm381_vm15, 1, %v1156_v51  ;;  %v385_v9 = vsel %vm384_vm0, 1, %v1156_v51  ;;  %p1040_p7 = pneg %p1039_p0 }
  0x84   : > { %v388_v10 = vsel %vm387_vm1, 1, %v1156_v51  ;;  %v391_v11 = vsel %vm390_vm9, 1, %v1156_v51  ;;  %vm392_vm2 = vcmp.le.f32.partialorder %v1356_v55, %v1331_v45  ;;  %vm395_vm3 = vcmp.le.f32.partialorder %v1328_v43, %v1333_v46  ;;  %p1046_p6 = por %p1045_p3, %p1044_p13 }
  0x85   : > { %v1400_v12 = vadd.s32 %v370_v4, %v367_v6  ;;  %v380_v13 = vadd.s32 %v379_v5, %v377_v7  ;;  %v393_v14 = vsel %vm392_vm2, 1, %v1156_v51  ;;  %v396_v16 = vsel %vm395_vm3, 1, %v1156_v51 }
  0x86   : > { %v1404_v19 = vadd.s32 %v393_v14, %v391_v11  ;;  %v397_v20 = vadd.s32 1, %v396_v16  ;;  %vm398_vm4 = vcmp.le.f32.partialorder %v1356_v55, %v1333_v46  ;;  %vm401_vm5 = vcmp.le.f32.partialorder %v1328_v43, %v1347_v50  ;;  %p1047_p4 = pnand %p1046_p6, %p1040_p7 }
  0x87   : > { %v383_v21 = vadd.s32 %v382_v8, %v380_v13  ;;  %v399_v22 = vsel %vm398_vm4, 1, %v1156_v51  ;;  %v402_v23 = vsel %vm401_vm5, 1, %v1156_v51  ;;  %vm404_vm6 = vcmp.le.f32.partialorder %v1356_v55, %v1347_v50 }
  0x88   : > { %v1414_v24 = vadd.s32 %v399_v22, %v397_v20  ;;  %v403_v25 = vadd.s32 2, %v402_v23  ;;  %v405_v26 = vsel %vm404_vm6, 1, %v1156_v51  ;;  %vm407_vm7 = vcmp.le.f32.partialorder %v1328_v43, %v1354_v54 }
  0x89   : > { %v386_v27 = vadd.s32 %v385_v9, %v383_v21  ;;  %v408_v28 = vsel %vm407_vm7, 1, %v1156_v51  ;;  %vm410_vm8 = vcmp.le.f32.partialorder %v1356_v55, %v1354_v54  ;;  %vm413_vm9 = vcmp.le.f32.partialorder %v1328_v43, %v1362_v59 }
  0x8a   : > { %v1424_v29 = vadd.s32 %v405_v26, %v403_v25  ;;  %v409_v30 = vadd.s32 3, %v408_v28  ;;  %v411_v31 = vsel %vm410_vm8, 1, %v1156_v51  ;;  %v414_v32 = vsel %vm413_vm9, 1, %v1156_v51 }
  0x8b   : > { %v389_v33 = vadd.s32 %v388_v10, %v386_v27  ;;  %v415_v34 = vadd.s32 4, %v414_v32  ;;  %vm416_vm10 = vcmp.le.f32.partialorder %v1356_v55, %v1362_v59  ;;  %vm419_vm11 = vcmp.le.f32.partialorder %v1328_v43, %v1364_v60 }
  0x8c   : > { %v1432_v35 = vadd.s32 %v411_v31, %v409_v30  ;;  %v417_v36 = vsel %vm416_vm10, 1, %v1156_v51  ;;  %v420_v37 = vsel %vm419_vm11, 1, %v1156_v51  ;;  %vm422_vm12 = vcmp.le.f32.partialorder %v1356_v55, %v1364_v60 }
  0x8d   : > { %v1438_v38 = vadd.s32 %v417_v36, %v415_v34  ;;  %v421_v39 = vadd.s32 5, %v420_v37  ;;  %v423_v40 = vsel %vm422_vm12, 1, %v1156_v51  ;;  %v434_v41 = vrot.slane %v1400_v12, %v1340_v48 }
  0x8e   : > { %v453_v42 = vrot.slane %v1328_v43, %v1340_v48  ;;  %v475_v44 = vrot.slane %v389_v33, %v1340_v48  ;;  %v494_v49 = vrot.slane %v1356_v55, %v1340_v48  ;;  %v516_v52 = vrot.slane %v1404_v19, %v1340_v48 }
  0x8f   : > { %v1450_v53 = vadd.s32 %v423_v40, %v421_v39  ;;  %v442_v56 = vrot.slane %v434_v41, %v1337_v47  ;;  %v538_v51 = vrot.slane %v1414_v24, %v1340_v48  ;;  %v560_v57 = vrot.slane %v1424_v29, %v1340_v48 }
  0x90   : > { %v463_v58 = vrot.slane %v453_v42, %v1337_v47  ;;  %v483_v61 = vrot.slane %v475_v44, %v1337_v47  ;;  %v504_v62 = vrot.slane %v494_v49, %v1337_v47  ;;  %v524_v63 = vrot.slane %v516_v52, %v1337_v47 }
  0x91   : > { %vm444_vm13 = vcmp.eq.s32.totalorder %v1305_v3, %v442_v56  ;;  %v546_v0 = vrot.slane %v538_v51, %v1337_v47  ;;  %v568_v1 = vrot.slane %v560_v57, %v1337_v47  ;;  %v582_v2 = vrot.slane %v1432_v35, %v1340_v48 }
  0x92   : > { %vm485_vm14 = vcmp.eq.s32.totalorder %v1305_v3, %v483_v61  ;;  %vm526_vm15 = vcmp.eq.s32.totalorder %v1305_v3, %v524_v63  ;;  %v604_v4 = vrot.slane %v1438_v38, %v1340_v48  ;;  %v465_v5 = vsel %vm444_vm13, %v463_v58, 0.0 }
  0x93   : > { %v506_v6 = vsel %vm485_vm14, %v504_v62, 0.0  ;;  %v528_v7 = vsel %vm526_vm15, %v1331_v45, 0.0  ;;  %vm548_vm0 = vcmp.eq.s32.totalorder %v1305_v3, %v546_v0  ;;  %vm570_vm1 = vcmp.eq.s32.totalorder %v1305_v3, %v568_v1 }
  0x94   : > { %v508_v8 = vadd.f32 %v506_v6, %v465_v5  ;;  %v550_v9 = vsel %vm548_vm0, %v1333_v46, 0.0  ;;  %v590_v10 = vrot.slane %v582_v2, %v1337_v47  ;;  %v612_v11 = vrot.slane %v604_v4, %v1337_v47 }
  0x95   : > { %v626_v13 = vrot.slane %v1450_v53, %v1340_v48  ;;  %v430_v14 = vrot.slane %v1400_v12, %v1337_v47  ;;  %v449_v16 = vrot.slane %v1328_v43, %v1337_v47  ;;  %v471_v21 = vrot.slane %v389_v33, %v1337_v47 }
  0x96   : > { %v530_v20 = vadd.f32 %v528_v7, %v508_v8  ;;  %vm592_vm2 = vcmp.eq.s32.totalorder %v1305_v3, %v590_v10  ;;  %v490_v22 = vrot.slane %v1356_v55, %v1337_v47  ;;  %v572_v23 = vsel %vm570_vm1, %v1347_v50, 0.0 }
  0x97   : > { %vm614_vm3 = vcmp.eq.s32.totalorder %v1305_v3, %v612_v11  ;;  %v634_v48 = vrot.slane %v626_v13, %v1337_v47  ;;  %v438_v25 = vrot.slane %v430_v14, %v1337_v47  ;;  %v594_v26 = vsel %vm592_vm2, %v1354_v54, 0.0 }
  0x98   : > { %v552_v12 = vadd.f32 %v550_v9, %v530_v20  ;;  %v459_v43 = vrot.slane %v449_v16, %v1337_v47  ;;  %v479_v27 = vrot.slane %v471_v21, %v1337_v47  ;;  %v616_v28 = vsel %vm614_vm3, %v1362_v59, 0.0 }
  0x99   : > { %vm443_vm4 = vcmp.eq.s32.totalorder %v1305_v3, %v438_v25  ;;  %v500_v55 = vrot.slane %v490_v22, %v1337_v47  ;;  %v512_v30 = vrot.slane %v1404_v19, %v1337_v47  ;;  %vm636_vm5 = vcmp.eq.s32.totalorder %v1305_v3, %v634_v48 }
  0x9a   : > { %v574_v31 = vadd.f32 %v572_v23, %v552_v12  ;;  %v464_v32 = vsel %vm443_vm4, %v459_v43, 0.0  ;;  %vm484_vm6 = vcmp.eq.s32.totalorder %v1305_v3, %v479_v27  ;;  %v534_v36 = vrot.slane %v1414_v24, %v1337_v47 }
  0x9b   : > { %v505_v33 = vsel %vm484_vm6, %v500_v55, 0.0  ;;  %v520_v34 = vrot.slane %v512_v30, %v1337_v47  ;;  %v556_v37 = vrot.slane %v1424_v29, %v1337_v47  ;;  %v578_v19 = vrot.slane %v1432_v35, %v1337_v47 }
  0x9c   : > { %v596_v39 = vadd.f32 %v594_v26, %v574_v31  ;;  %v507_v40 = vadd.f32 %v505_v33, %v464_v32  ;;  %v600_v41 = vrot.slane %v1438_v38, %v1337_v47  ;;  %v542_v42 = vrot.slane %v534_v36, %v1337_v47 }
  0x9d   : > { %vm525_vm7 = vcmp.eq.s32.totalorder %v1305_v3, %v520_v34  ;;  %v564_v44 = vrot.slane %v556_v37, %v1337_v47  ;;  %v622_v24 = vrot.slane %v1450_v53, %v1337_v47  ;;  %v638_v49 = vsel %vm636_vm5, %v1364_v60, 0.0 }
  0x9e   : > { %v618_v29 = vadd.f32 %v616_v28, %v596_v39  ;;  %v527_v35 = vsel %vm525_vm7, %v1331_v45, 0.0  ;;  %v586_v38 = vrot.slane %v578_v19, %v1337_v47  ;;  %vm547_vm8 = vcmp.eq.s32.totalorder %v1305_v3, %v542_v42 }
  0x9f   : > { %v529_v52 = vadd.f32 %v527_v35, %v507_v40  ;;  %vm569_vm9 = vcmp.eq.s32.totalorder %v1305_v3, %v564_v44  ;;  %v608_v56 = vrot.slane %v600_v41, %v1337_v47  ;;  %v549_v53 = vsel %vm547_vm8, %v1333_v46, 0.0 }
  0xa0   : > { %v640_v51 = vadd.f32 %v638_v49, %v618_v29  ;;  %vm591_vm10 = vcmp.eq.s32.totalorder %v1305_v3, %v586_v38  ;;  %v630_v58 = vrot.slane %v622_v24, %v1337_v47  ;;  %v571_v45 = vsel %vm569_vm9, %v1347_v50, 0.0 }
  0xa1   : > { %v551_v57 = vadd.f32 %v549_v53, %v529_v52  ;;  %vm613_vm11 = vcmp.eq.s32.totalorder %v1305_v3, %v608_v56  ;;  %v593_v62 = vsel %vm591_vm10, %v1354_v54, 0.0  ;;  %vm653_vm13 = vcmask 64512  }
  0xa2   : > { %657 = vmatprep.subr.mxu0 %v640_v51  ;;  %729 = vst [vmem:[%s259_s6 + $0x8] sm:$0xff] %v640_v51  ;;  %vm635_vm12 = vcmp.eq.s32.totalorder %v1305_v3, %v630_v58  ;;  %v615_v47 = vsel %vm613_vm11, %v1362_v59, 0.0 }
  0xa3   : > { %v573_v61 = vadd.f32 %v571_v45, %v551_v57  ;;  %v637_v50 = vsel %vm635_vm12, %v1364_v60, 0.0 }
  0xa5   : > { %v595_v46 = vadd.f32 %v593_v62, %v573_v61 }
  0xa7   : > { %v617_v63 = vadd.f32 %v615_v47, %v595_v46 }
  0xa9   : > { %v639_v0 = vadd.f32 %v637_v50, %v617_v63 }
  0xab   : > { %658 = vmatpush1.msra.mxu0 %v639_v0  ;;  %728 = vst [vmem:[%s259_s6] sm:$0xff] %v639_v0 }
  0xac   : > { %919 = vmatmul.mubr.msk.f32.vlgmr.msra.gmra.mrb[0].mxu0 %vm653_vm13, %v652_v18 }
  0xad   : > { %1050 = shalt.err (!%p1047_p4)
}
  0xae   : > { %s1051_s14 = scalar_lea.hbm %s752_s21, 256  ;;  %s1055_s6 = scalar_lea.hbm %s1621_s3, 512 }
  0xaf   : > { %p1052_p10 = scmp.ne.s32.totalorder %s752_s21, %s1051_s14  ;;  %p1056_p2 = scmp.lt.u32.totalorder %s752_s21, %s1621_s3 }
  0xb0   : > { %p1057_p5 = scmp.lt.u32.totalorder %s1055_s6, %s1051_s14  ;;  %p1059_p8 = scmp.lt.u32.totalorder %s1051_s14, %s752_s21 }
  0xb1   : > { %p1053_p12 = pnand %p1052_p10, %p1631_p11 }
  0xb2   : > { %p1058_p9 = por %p1057_p5, %p1056_p2 }
  0xb3   : > { %p1054_p1 = pneg %p1053_p12 }
  0xb4   : > { %p1060_p0 = por %p1059_p8, %p1058_p9 }
  0xb6   : > { %p1061_p7 = pnand %p1060_p0, %p1054_p1 }
  0xb8   : > { %1064 = shalt.err (!%p1061_p7)
}
  0xb9   : > { %937 = dma.vmem_to_hbm [thread:$0]  (%p1631_p11), %s1538_s5, 256, %s752_s21, %s733_s22  }
  0xba   : > { %s266_s24 = scalar_lea.vmem [#allocation6], %s916_s27  ;;  %s1571_s14 = scalar_lea.hbm %s1622_s4, %s929_s7 }
  0xbb   : > { %s770_s10 = sshll.u32 %s266_s24, 4  ;;  %s738_s25 = scalar_lea.sflag [#allocation7], %s1295_s11  ;;  %s1564_s10 = int_to_ptr.vmem [resolvable:$true] %s770_s10 }
  0xbc   : > { %s1065_s5 = scalar_lea.vmem %s1564_s10, 256  ;;  %s1158_s27 = smov [#allocation6]  }
  0xbd   : > { %p1066_p13 = scmp.ne.s32.totalorder %s1564_s10, %s1065_s5  ;;  %s1069_s21 = sshll.u32 %s1158_s27, 4  ;;  %s1070_s21 = int_to_ptr.vmem [resolvable:$false] %s1069_s21 }
  0xbe   : > { %s1071_s22 = scalar_lea.vmem %s1070_s21, 512  ;;  %p1072_p4 = scmp.lt.s32.totalorder %s1564_s10, %s1070_s21 }
  0xbf   : > { %p1067_p3 = pnand %p1066_p13, %p1631_p11  ;;  %p1073_p10 = scmp.lt.s32.totalorder %s1071_s22, %s1065_s5 }
  0xc1   : > { %p1068_p6 = pneg %p1067_p3  ;;  %p1074_p12 = por %p1073_p10, %p1072_p4 }
  0xc3   : > { %p1075_p1 = pnand %p1074_p12, %p1068_p6 }
 0x17f   : > { %v723_v3 = vpop.f32.mrb[0].mxu0 }
 0x180   : > { %730 = vst [vmem:[%s266_s24] sm:$0xff] %v723_v3  ;;  %v725_v15 = vpop.f32.mrb[1].mxu0 }
 0x181   : > { %731 = vst [vmem:[%s266_s24 + $0x8] sm:$0xff] %v725_v15 }
 0x182   : > { %1078 = shalt.err (!%p1075_p1)
}
 0x183   : > { %s1079_s18 = scalar_lea.hbm %s1571_s14, 256  ;;  %s1083_s26 = scalar_lea.hbm %s1622_s4, 512 }
 0x184   : > { %p1080_p2 = scmp.ne.s32.totalorder %s1571_s14, %s1079_s18  ;;  %p1084_p8 = scmp.lt.u32.totalorder %s1571_s14, %s1622_s4 }
 0x185   : > { %p1085_p0 = scmp.lt.u32.totalorder %s1083_s26, %s1079_s18  ;;  %p1087_p13 = scmp.lt.u32.totalorder %s1079_s18, %s1571_s14 }
 0x186   : > { %p1081_p5 = pnand %p1080_p2, %p1631_p11 }
 0x187   : > { %p1086_p7 = por %p1085_p0, %p1084_p8 }
 0x188   : > { %p1082_p9 = pneg %p1081_p5 }
 0x189   : > { %p1088_p3 = por %p1087_p13, %p1086_p7 }
 0x18b   : > { %p1089_p6 = pnand %p1088_p3, %p1082_p9 }
 0x18d   : > { %1092 = shalt.err (!%p1089_p6)
}
 0x18e   : > { %938 = dma.vmem_to_hbm [thread:$0]  (%p1631_p11), %s1564_s10, 256, %s1571_s14, %s738_s25  }
 0x18f PF: > { %s782_s9 = sand.u32 1, %s1131_s15   ;;  %p1632_p4 = scmp.ne.s32.totalorder %s1627_s30, 0 }
 0x190   : > { %p1633_p10 = scmp.ge.s32.totalorder %s1151_s20, 2  ;;  %s783_s24 = scalar_lea.sflag [#allocation4], %s782_s9 }
 0x192   : > { %p946_p12 = pnand %p1633_p10, %p1632_p4 }
 0x194   : > { %1122 = dma.done.wait (!%p946_p12), %s783_s24, 256  }
 0x195   : > { %1124 = vsyncadd (!%p946_p12), %s783_s24, 4294967040  ;;  %s792_s12 = scalar_lea.sflag [#allocation7], %s782_s9 }
 0x196   : > { %1126 = dma.done.wait (!%p946_p12), %s792_s12, 256  }
 0x197   : > { %1128 = vsyncadd (!%p946_p12), %s792_s12, 4294967040  ;;  %s24_s20 = sadd.s32 1, %s1151_s20   ;;  %s1634_s15 = smov %s1135_s16 }
 0x198   : > { %p21_p1 = scmp.ge.s32.totalorder %s24_s20, 4   ;;  %s1635_s16 = smov %s1139_s17 }
 0x199   : > { %s1636_s17 = smov %s1240_s29  ;;  %s1637_s18 = smov %s1147_s19 }
 0x19a   : > { %s1638_s19 = smov %s1640_s23  ;;  %23 = sbr.rel (!%p21_p1) target bundleno = 8 (0x8), region = 100 }
 0x1a1   :  { %797 = vsyncpa [#allocation3], 1 }
 0x1a2   :  { %799 = vsyncpa [#allocation3 + $0x1], 1 }
 0x1a3   :  { %800 = vsyncpa [#allocation4], 1 }
 0x1a4   :  { %802 = vsyncpa [#allocation4 + $0x1], 1 }
 0x1a5   :  { %803 = vsyncpa [#allocation7], 1 }
 0x1a6   :  { %805 = vsyncpa [#allocation7 + $0x1], 1 }

</bundles_post_ra>
